<compile_context>
chip_gen: v6e
topology: v6e:2x2x1
jax: 0.10.0
libtpu: 0.0.40
codegen_flags: <defaults>
</compile_context>

<pallas_src>
import functools

import jax
import jax.numpy as jnp
from jax.experimental import pallas as pl
from jax.experimental.pallas import tpu as pltpu

_BN_SCALE = float(1.0 / (1.0 + 1e-5) ** 0.5)   # eval-mode BatchNorm2d, default stats
_MXU_DTYPE = jnp.bfloat16                      # MXU operand dtype (f32 accumulate)


# ----------------------------------------------------------------- Pallas kernels
def _apply_act(x, act):
    if act == 'leaky':
        return jnp.where(x > 0, x, 0.02 * x)
    if act == 'relu':
        return jnp.maximum(x, 0.0)
    return x


def _mm_kernel(a_ref, b_ref, o_ref, *, act):
    acc = jnp.dot(a_ref[...], b_ref[...], preferred_element_type=jnp.float32)
    o_ref[...] = _apply_act(acc, act)


def _mm_bias_kernel(a_ref, b_ref, bias_ref, o_ref, *, act):
    acc = jnp.dot(a_ref[...], b_ref[...], preferred_element_type=jnp.float32)
    o_ref[...] = _apply_act(acc + bias_ref[...], act)


def _matmul_act_impl(a, w, b, act):
    """act(a @ w + b) as one Pallas MXU matmul; bias + activation fused in epilogue."""
    M, K = a.shape
    N = w.shape[1]
    a = a.astype(w.dtype)
    Np = N
    if N < 8:                       # keep the lane dim sane for 1/4-channel outputs
        Np = 8
        w = jnp.pad(w, ((0, 0), (0, Np - N)))
        if b is not None:
            b = jnp.pad(b, ((0, 0), (0, Np - N)))
    # split M only when it stays a multiple of 128 -> parallel grid >= 2 (megacore)
    tm = 128 if (M > 128 and M % 128 == 0) else M
    grid = (M // tm,)
    in_specs = [pl.BlockSpec((tm, K), lambda i: (i, 0)),
                pl.BlockSpec((K, Np), lambda i: (0, 0))]
    args = [a, w]
    if b is not None:
        in_specs.append(pl.BlockSpec((1, Np), lambda i: (0, 0)))
        args.append(b)
        kernel = functools.partial(_mm_bias_kernel, act=act)
    else:
        kernel = functools.partial(_mm_kernel, act=act)
    out = pl.pallas_call(
        kernel,
        out_shape=jax.ShapeDtypeStruct((M, Np), jnp.float32),
        grid=grid,
        in_specs=in_specs,
        out_specs=pl.BlockSpec((tm, Np), lambda i: (i, 0)),
        compiler_params=pltpu.CompilerParams(dimension_semantics=("parallel",)),
        cost_estimate=pl.CostEstimate(
            flops=2 * M * K * Np, transcendentals=0,
            bytes_accessed=(M * K + K * Np) * 2 + M * Np * 4),
    )(*args)
    return out if Np == N else out[:, :N]


@functools.partial(jax.jit, static_argnames=('act',))
def _matmul_act_jit(a, w, b, act):
    return _matmul_act_impl(a, w, b, act)


def matmul_act(a, w, b=None, act='none'):
    return _matmul_act_jit(a, w, b, act=act)


def _bmm_kernel(a_ref, b_ref, o_ref):
    o_ref[...] = jnp.dot(a_ref[...], b_ref[...], preferred_element_type=jnp.float32)


def _batched_matmul_impl(a, b):
    """(G,M,K) @ (G,K,N) -> (G,M,N) f32; one 'parallel' grid step per G.

    Batches sibling matmuls (4 dilated-inception taps, per-image attention)
    into a single pallas_call instead of a Python loop of launches."""
    G, M, K = a.shape
    N = b.shape[2]
    a = a.astype(_MXU_DTYPE)
    b = b.astype(_MXU_DTYPE)
    Np = N
    if N < 8:
        Np = 8
        b = jnp.pad(b, ((0, 0), (0, 0), (0, Np - N)))
    out = pl.pallas_call(
        _bmm_kernel,
        out_shape=jax.ShapeDtypeStruct((G, M, Np), jnp.float32),
        grid=(G,),
        in_specs=[pl.BlockSpec((None, M, K), lambda g: (g, 0, 0)),
                  pl.BlockSpec((None, K, Np), lambda g: (g, 0, 0))],
        out_specs=pl.BlockSpec((None, M, Np), lambda g: (g, 0, 0)),
        compiler_params=pltpu.CompilerParams(dimension_semantics=("parallel",)),
        cost_estimate=pl.CostEstimate(
            flops=2 * G * M * K * Np, transcendentals=0,
            bytes_accessed=(G * M * K + G * K * Np) * 2 + G * M * Np * 4),
    )(a, b)
    return out if Np == N else out[..., :N]


batched_matmul = jax.jit(_batched_matmul_impl)


# ----------------------------------------------------------------- conv / pool glue
def _im2col(x, k, stride=1, padding=0, dilation=1):
    B, H, W, C = x.shape
    if k == 1 and stride == 1 and padding == 0:
        return x.reshape(B * H * W, C), H, W
    xp = jnp.pad(x, ((0, 0), (padding, padding), (padding, padding), (0, 0)))
    Ho = (H + 2 * padding - dilation * (k - 1) - 1) // stride + 1
    Wo = (W + 2 * padding - dilation * (k - 1) - 1) // stride + 1
    cols = []
    for kh in range(k):
        for kw in range(k):
            hs, ws = kh * dilation, kw * dilation
            cols.append(xp[:, hs:hs + stride * (Ho - 1) + 1:stride,
                            ws:ws + stride * (Wo - 1) + 1:stride, :])
    return jnp.concatenate(cols, axis=-1).reshape(B * Ho * Wo, k * k * C), Ho, Wo


@functools.partial(jax.jit,
                   static_argnames=('k', 'stride', 'padding', 'dilation', 'act'))
def _conv2d_jit(x, w, b, k, stride, padding, dilation, act):
    """im2col + Pallas matmul + reshape fused in one compiled dispatch per signature."""
    patches, Ho, Wo = _im2col(x, k, stride, padding, dilation)
    out = _matmul_act_impl(patches, w, b, act)
    return out.reshape(x.shape[0], Ho, Wo, w.shape[1])


def conv2d(p, x, stride=1, padding=0, dilation=1, act='none'):
    return _conv2d_jit(x, p['w'], p['b'], k=p['k'], stride=stride,
                       padding=padding, dilation=dilation, act=act)


@jax.jit
def _conv_transpose2d_jit(x, w, b):
    """ConvTranspose2d(k=3, s=2, p=1, op=1) via input dilation + stride-1 conv
    (weight stored already in the equivalent forward-conv matrix layout)."""
    B, H, W, C = x.shape
    xd = jnp.zeros((B, 2 * H - 1, 2 * W - 1, C), x.dtype)
    xd = xd.at[:, ::2, ::2, :].set(x)
    xd = jnp.pad(xd, ((0, 0), (1, 2), (1, 2), (0, 0)))
    patches, Ho, Wo = _im2col(xd, 3)
    out = _matmul_act_impl(patches, w, b, 'none')
    return out.reshape(B, Ho, Wo, w.shape[1])


def conv_transpose2d(p, x):
    return _conv_transpose2d_jit(x, p['w'], p['b'])


@jax.jit
def max_pool2(x):
    B, H, W, C = x.shape
    return jnp.max(x.reshape(B, H // 2, 2, W // 2, 2, C), axis=(2, 4))


@jax.jit
def avg_pool2(x):
    B, H, W, C = x.shape
    return jnp.mean(x.reshape(B, H // 2, 2, W // 2, 2, C), axis=(2, 4))


@jax.jit
def leaky(x):
    return jnp.where(x > 0, x, 0.02 * x)


@jax.jit
def layer_norm(t):
    m = jnp.mean(t, axis=-1, keepdims=True)
    v = jnp.mean((t - m) ** 2, axis=-1, keepdims=True)
    return (t - m) * jax.lax.rsqrt(v + 1e-5)


@jax.jit
def _softmax_scaled_jit(s, scale):
    return jax.nn.softmax(s * scale, axis=-1)


# ----------------------------------------------------------------- deterministic params
class ParamGen:
    """Synthetic parameters in kernel-ready layout: conv/linear weights as (K, N)
    bf16 MXU operands (BatchNorm folded in where applicable), biases as (1, N) f32."""

    def __init__(self, seed=0):
        self._key = jax.random.PRNGKey(seed)
        self._n = 0

    def _next(self):
        self._n += 1
        return jax.random.fold_in(self._key, self._n)

    def _randn(self, fan_in, shape):
        w = jax.random.normal(self._next(), shape, jnp.float32)
        return w * (0.5 / float(fan_in) ** 0.5)

    def conv(self, cout, cin, k, bias=False, bn_scale=1.0):
        w = self._randn(cin * k * k, (k, k, cin, cout)) * bn_scale
        return {'w': w.reshape(k * k * cin, cout).astype(_MXU_DTYPE),
                'b': jnp.zeros((1, cout), jnp.float32) if bias else None,
                'k': k, 'cout': cout}

    def convT(self, cin, cout):
        w = self._randn(cin * 9, (3, 3, cin, cout))
        return {'w': w.reshape(9 * cin, cout).astype(_MXU_DTYPE),
                'b': jnp.zeros((1, cout), jnp.float32),
                'k': 3, 'cout': cout}

    def mat(self, cin, cout):        # bias-free linear as an MXU operand
        return self._randn(cin, (cin, cout)).astype(_MXU_DTYPE)

    def mat_f32(self, cin, cout):    # tiny gate linears kept on XLA
        return self._randn(cin, (cin, cout))


# ----------------------------------------------------------------- building blocks
def init_se(pg, channel, reduction=4):
    if reduction < 8:                # QSELayer forces reduction=1 when reduction<8
        reduction = 1
    return {'fc1': pg.mat_f32(channel, channel // reduction),
            'fc2': pg.mat_f32(channel // reduction, channel)}


@jax.jit
def _se_gate_jit(x, fc1, fc2):
    y = jnp.mean(x, axis=(1, 2))
    y = jnp.maximum(jnp.dot(y, fc1), 0.0)
    y = jax.nn.sigmoid(jnp.dot(y, fc2))
    return x * y[:, None, None, :]


def se_fwd(p, x):
    # TODO(synk): QLinear surrogate = plain linear.  M == batch (tiny), keep on XLA.
    return _se_gate_jit(x, p['fc1'], p['fc2'])


def init_cbam(pg, channel, reduction=16, spatial_kernel=7):
    if channel <= 16:
        reduction = 1
    return {'m1': pg.mat_f32(channel, channel // reduction),
            'm2': pg.mat_f32(channel // reduction, channel),
            'spat': pg.conv(1, 2, spatial_kernel),
            'k': spatial_kernel}


@jax.jit
def _cbam_channel_jit(x, m1, m2):
    B = x.shape[0]
    # channel attention: max- & avg-pooled vectors through the MLP in one pass
    v = jnp.concatenate([jnp.max(x, axis=(1, 2)), jnp.mean(x, axis=(1, 2))], axis=0)
    v = jnp.maximum(jnp.dot(v, m1), 0.0)
    v = jnp.dot(v, m2)
    ch = jax.nn.sigmoid(v[:B] + v[B:])[:, None, None, :]
    x = ch * x
    mo = jnp.max(x, axis=-1, keepdims=True)
    ao = jnp.mean(x, axis=-1, keepdims=True)
    return x, jnp.concatenate([mo, ao], -1)


@jax.jit
def _cbam_spatial_apply_jit(x, sp_logits):
    return jax.nn.sigmoid(sp_logits) * x


def cbam_fwd(p, x):
    x, mm = _cbam_channel_jit(x, p['m1'], p['m2'])
    # spatial attention: 7x7 conv over [max, mean] maps (Pallas matmul)
    sp = conv2d(p['spat'], mm, padding=p['k'] // 2)
    return _cbam_spatial_apply_jit(x, sp)


def init_mixup(pg, channel):
    return {'a1': init_cbam(pg, channel), 'a2': init_cbam(pg, channel)}


def mixup_fwd(p, x_skip, x_unet):
    return cbam_fwd(p['a1'], x_skip) + cbam_fwd(p['a2'], x_unet)


def init_resblock(pg, cin, cout, downsample=False, upsample=False):
    # _Residual_Block / _Residual_Block_REAL (QConv treated as Conv2d), wide_width=True
    mid = max(cin, cout)
    return {'conv1': pg.conv(mid, cin, 3),
            'conv2': pg.conv(cout, mid, 3, bn_scale=_BN_SCALE),   # eval BN folded in
            'se': init_se(pg, cout),
            'trans': pg.conv(cout, cin, 1) if cin != cout else None,
            'upconv': pg.convT(cin, cin) if upsample else None,
            'down': downsample, 'up': upsample}


def resblock_fwd(p, x):
    if p['up']:
        x = conv_transpose2d(p['upconv'], x)
    identity = x
    out = conv2d(p['conv1'], x, padding=1, act='leaky')   # LeakyReLU fused in epilogue
    out = conv2d(p['conv2'], out, padding=1)              # BatchNorm folded into weights
    out = se_fwd(p['se'], out)
    if p['trans'] is not None:
        identity = conv2d(p['trans'], identity)
    out = out + identity
    if p['down']:
        out = avg_pool2(out)
    return out


# TODO(synk): QDilatedInception is not defined in the reference source; surrogate =
# four parallel 3x3 convs with dilations 1..4, outputs concatenated (4*in_channels).
def init_dilated_inception(pg, cin, cout):
    w = jnp.stack([pg.conv(cout, cin, 3)['w'] for _ in range(4)], axis=0)
    return {'w': w, 'cout': cout}


@jax.jit
def _dilated_inception_jit(x, w):
    B, H, W, _ = x.shape
    pats = jnp.stack([_im2col(x, 3, 1, d, d)[0] for d in (1, 2, 3, 4)], axis=0)
    out = _batched_matmul_impl(pats, w)                    # (4, M, cout)
    cout = w.shape[2]
    return jnp.transpose(out, (1, 0, 2)).reshape(B, H, W, 4 * cout)


def dilated_inception_fwd(p, x):
    return _dilated_inception_jit(x, p['w'])


def init_qdres(pg, cin, cout):
    return {'di': init_dilated_inception(pg, cin, cin),
            'rb1': init_resblock(pg, cin * 4, cin),
            'rb2': init_resblock(pg, cin, cout),
            'same': cin == cout}


def qdres_fwd(p, x):
    x = dilated_inception_fwd(p['di'], x)
    x = resblock_fwd(p['rb1'], x)
    x = leaky(x)
    out = resblock_fwd(p['rb2'], x)
    if p['same']:
        out = out + x
    return out


# TODO(synk): QMobViTBlock is not defined in the reference source; surrogate =
# MobileViT-style block (local 3x3 conv -> 1x1 to attn_unit_dim -> single-head global
# self-attention + FFN with pre-LayerNorm -> 1x1 back -> 3x3 fusion over concat).
def init_mobvit(pg, cin, d):
    return {'local': pg.conv(cin, cin, 3),
            'pin': pg.conv(d, cin, 1),
            'wqkv': pg.mat(d, 3 * d),
            'wo': pg.mat(d, d),
            'f1': pg.mat(d, 2 * d), 'f2': pg.mat(2 * d, d),
            'pout': pg.conv(cin, d, 1),
            'fuse': pg.conv(cin, 2 * cin, 3),
            'd': d}


def mobvit_fwd(p, x):
    B, H, W, _ = x.shape
    d = p['d']
    M = B * H * W
    y = conv2d(p['local'], x, padding=1)
    t = conv2d(p['pin'], y).reshape(B, H * W, d)
    tn = layer_norm(t).reshape(M, d)
    qkv = matmul_act(tn, p['wqkv'])                       # fused q|k|v projection
    q, k, v = [u.reshape(B, H * W, d) for u in jnp.split(qkv, 3, axis=-1)]
    s = batched_matmul(q, jnp.transpose(k, (0, 2, 1)))
    a = _softmax_scaled_jit(s, 1.0 / float(d) ** 0.5)
    ctx = batched_matmul(a, v).reshape(M, d)
    t = t + matmul_act(ctx, p['wo']).reshape(B, H * W, d)
    hn = layer_norm(t).reshape(M, d)
    h = matmul_act(hn, p['f1'], act='relu')               # ReLU fused in epilogue
    t = t + matmul_act(h, p['f2']).reshape(B, H * W, d)
    y2 = conv2d(p['pout'], t.reshape(B, H, W, d))
    return conv2d(p['fuse'], jnp.concatenate([x, y2], -1), padding=1)


_BLOCK_FWD = {'rb': resblock_fwd, 'qd': qdres_fwd, 'mv': mobvit_fwd}


def seq_fwd(seq, x):
    for kind, p in seq:
        x = _BLOCK_FWD[kind](p, x)
    return x


# ----------------------------------------------------------------- QNLNet
def init_qnlnet(pg, in_chs, num_blocks, mid, out):
    bef = [('qd', init_qdres(pg, in_chs, mid))]
    bef += [('rb', init_resblock(pg, mid, mid)) for _ in range(num_blocks)]
    attn_dim = mid if mid > 32 else 32
    qnlr = [('qd', init_qdres(pg, mid, mid)),
            ('mv', init_mobvit(pg, mid, attn_dim)),
            ('mv', init_mobvit(pg, mid, attn_dim)),
            ('rb', init_resblock(pg, mid, mid))]
    qldr = []
    for _ in range(3):
        qldr += [('qd', init_qdres(pg, mid, mid)),
                 ('rb', init_resblock(pg, mid, mid)),
                 ('rb', init_resblock(pg, mid, mid))]
    aft = [('rb', init_resblock(pg, mid, mid)) for _ in range(num_blocks)]
    aft += [('qd', init_qdres(pg, mid, out))]
    return {'bef': bef, 'qnlr': qnlr, 'qldr': qldr,
            'aggcnn': init_mixup(pg, mid), 'aggvit': init_mixup(pg, mid), 'aft': aft}


def qnlnet_fwd(p, x):
    x = seq_fwd(p['bef'], x)
    res2 = x
    x_qnlr = seq_fwd(p['qnlr'], x)
    x_qldr = seq_fwd(p['qldr'], x)
    x = mixup_fwd(p['aggcnn'], res2, x_qnlr)
    x = mixup_fwd(p['aggvit'], x, x_qldr)
    return seq_fwd(p['aft'], x)


# ----------------------------------------------------------------- QSkipNet / QUNet
def init_qskipnet(pg, in_chs=16, num_scales=3, delta_chs=16):
    base = in_chs
    cur = in_chs
    qvit, compress, dilate, up = {}, {}, {}, {}
    for i in range(num_scales):
        qvit[i] = init_mobvit(pg, cur, cur * (num_scales - i))
        compress[i] = init_qdres(pg, cur, base)
        dilate[i] = [('qd', init_qdres(pg, base * (4 - i), cur))]
        dilate[i] += [('rb', init_resblock(pg, cur, cur)) for _ in range(3)]
        up[i] = pg.convT(base * (4 - i), base * (4 - i))
        cur += delta_chs
    compress[num_scales] = init_qdres(pg, cur, base)
    up[num_scales] = pg.convT(base, base)
    return {'qvit': qvit, 'compress': compress, 'dilate': dilate, 'up': up,
            'ns': num_scales}


def qskipnet_fwd(p, res_list):
    ns = p['ns']
    nllist = []
    up_fea = qdres_fwd(p['compress'][ns], res_list[ns])
    up_fea = conv_transpose2d(p['up'][ns], up_fea)
    for i in range(ns):
        idx = ns - i - 1
        vit_fea = mobvit_fwd(p['qvit'][idx], res_list[idx])
        qcnn_fea = qdres_fwd(p['compress'][idx], res_list[idx])
        up_fea = jnp.concatenate([up_fea, qcnn_fea], axis=-1)
        qcnn_fea = seq_fwd(p['dilate'][idx], up_fea)
        if i < ns - 1:
            # (reference also computes UP['0'](Up_fea) on the last iteration, unused)
            up_fea = conv_transpose2d(p['up'][idx], up_fea)
        nllist.append(res_list[idx] + vit_fea - qcnn_fea)
    return nllist[::-1]


def init_qunet(pg, num_blocks=4, in_chs=16, num_layers=4, delta_chs=16, num_scales=3):
    p = {'nb': num_blocks, 'ns': num_scales}
    p['qhead'] = pg.conv(in_chs, 4, 3, bias=True)       # QConv surrogate
    p['skip'] = init_qskipnet(pg, in_chs=in_chs, num_scales=num_scales,
                              delta_chs=delta_chs)
    cur = in_chs
    enc, dec = [], []
    for i in range(num_blocks):
        layer = [('rb', init_resblock(pg, cur, cur + delta_chs,
                                      downsample=(i < num_scales)))]
        layer += [('rb', init_resblock(pg, cur + delta_chs, cur + delta_chs))
                  for _ in range(num_layers - 1)]
        enc.append(layer)
        cur += delta_chs
    for i in range(num_blocks):
        layer = [('rb', init_resblock(pg, cur, cur - delta_chs,
                                      upsample=(i >= num_blocks - num_scales)))]
        layer += [('rb', init_resblock(pg, cur - delta_chs, cur - delta_chs))
                  for _ in range(num_layers - 1)]
        dec.append(layer)
        cur -= delta_chs
    p['enc'], p['dec'] = enc, dec
    p['qtail'] = pg.conv(4, cur, 3, bias=True)
    return p


def qunet_fwd(p, x):
    nb, ns = p['nb'], p['ns']
    x4 = x
    x = conv2d(p['qhead'], x, padding=1)
    res, res_nl = [], [x]
    for i in range(nb):
        x = seq_fwd(p['enc'][i], x)
        res.append(x)
        if i < ns:
            res_nl.append(x)
    res = res[::-1]
    nllist = qskipnet_fwd(p['skip'], res_nl)
    for i in range(nb):
        if i > nb - ns:
            x = x + nllist[nb - i]
        else:
            x = x + res[i]
        x = seq_fwd(p['dec'][i], x)
    x = x + nllist[0]
    x = conv2d(p['qtail'], x, padding=1)
    return x + x4


# ----------------------------------------------------------------- QDerainNet
def init_qderainnet(pg):
    return {'head': pg.conv(1, 3, 3),                   # bias=False
            'qnl0': init_qnlnet(pg, 48 + 4, 4, 64, 4),
            'qnl1': init_qnlnet(pg, 32 + 4, 3, 48, 48),
            'up1': pg.convT(48, 48),
            'qnl2': init_qnlnet(pg, 4, 2, 32, 32),
            'up2': pg.convT(32, 32),
            'se1': init_mixup(pg, 4),
            'tail0': pg.conv(16, 4, 3, bias=True),
            'tail1': pg.conv(4, 16, 3, bias=True),
            'qunet': init_qunet(pg)}


def qderainnet_fwd(p, x_nchw):
    x = jnp.transpose(x_nchw, (0, 2, 3, 1)).astype(jnp.float32)    # NCHW -> NHWC
    r = conv2d(p['head'], x, padding=1)
    x = jnp.concatenate([r, x], axis=-1)
    x_init = x
    x1 = max_pool2(x)
    x2 = max_pool2(x1)
    x2 = qnlnet_fwd(p['qnl2'], x2)
    x2 = conv_transpose2d(p['up2'], x2)
    x1 = jnp.concatenate([x1, x2], axis=-1)
    x1 = qnlnet_fwd(p['qnl1'], x1)
    x1 = conv_transpose2d(p['up1'], x1)
    x = jnp.concatenate([x, x1], axis=-1)
    x = qnlnet_fwd(p['qnl0'], x)
    x = mixup_fwd(p['se1'], x, x_init)
    res = x
    t = conv2d(p['tail0'], x, padding=1)
    t = conv2d(p['tail1'], t, padding=1)
    x = res + t
    out_unet = qunet_fwd(p['qunet'], x_init)
    x = out_unet + x
    out = x[..., 1:]                                               # drop channel 0
    return jnp.transpose(out, (0, 3, 1, 2))                        # NHWC -> NCHW


# ----------------------------------------------------------------- main
if __name__ == "__main__":
    key = jax.random.PRNGKey(0)
    x = jax.random.normal(key, (1, 3, 16, 16), jnp.float32)        # NCHW, like PyTorch

    pg = ParamGen(seed=0)
    params = init_qderainnet(pg)

    out = qderainnet_fwd(params, x)
    out = jax.block_until_ready(out)
    assert out.shape == (1, 3, 16, 16), out.shape
    print("KERNEL_OK")
</pallas_src>

<mosaic_0001>
module attributes {stable_mosaic.version = 11 : i64} {
  func.func @_mm_kernel(%arg0: i32, %arg1: memref<128x27xbf16, #tpu.memory_space<vmem>>, %arg2: memref<27x8xbf16, #tpu.memory_space<vmem>>, %arg3: memref<128x8xf32, #tpu.memory_space<vmem>>) attributes {dimension_semantics = [#tpu.dimension_semantics<parallel>], iteration_bounds = array<i64: 2>, scalar_prefetch = 0 : i64, scratch_operands = 0 : i64, tpu.core_type = #tpu.core_type<tc>, window_params = [{transform_indices = @transform_0, window_bounds = array<i64: 128, 27>}, {pipeline_mode = #tpu.pipeline_mode<synchronous>, transform_indices = @transform_1, window_bounds = array<i64: 27, 8>}, {transform_indices = @transform_2, window_bounds = array<i64: 128, 8>}]} {
    %c0 = arith.constant 0 : index
    %c0_0 = arith.constant 0 : index
    %0 = vector.load %arg1[%c0, %c0_0] : memref<128x27xbf16, #tpu.memory_space<vmem>>, vector<128x27xbf16>
    %c0_1 = arith.constant 0 : index
    %c0_2 = arith.constant 0 : index
    %1 = vector.load %arg2[%c0_1, %c0_2] : memref<27x8xbf16, #tpu.memory_space<vmem>>, vector<27x8xbf16>
    %cst = arith.constant dense<0.000000e+00> : vector<128x8xf32>
    %2 = tpu.matmul %0, %1, %cst {dimension_numbers = #tpu.dot_dimension_numbers<[1], [0], [0], [1], [0, 0, 1, 1], [], []>} : vector<128x27xbf16>, vector<27x8xbf16>, vector<128x8xf32> -> vector<128x8xf32>
    %c0_3 = arith.constant 0 : index
    %c0_4 = arith.constant 0 : index
    %3 = vector.load %arg3[%c0_3, %c0_4] : memref<128x8xf32, #tpu.memory_space<vmem>>, vector<128x8xf32>
    tpu.vector_store %arg3[%c0_3, %c0_4], %2 {strides = array<i32>} : memref<128x8xf32, #tpu.memory_space<vmem>>, vector<128x8xf32>,
    return
  }
  func.func @transform_0(%arg0: i32) -> (i32, i32) {
    %c0_i32 = arith.constant 0 : i32
    %c0_i32_0 = arith.constant 0 : i32
    return %arg0, %c0_i32 : i32, i32
  }
  func.func @transform_1(%arg0: i32) -> (i32, i32) {
    %c0_i32 = arith.constant 0 : i32
    %c0_i32_0 = arith.constant 0 : i32
    %c0_i32_1 = arith.constant 0 : i32
    return %c0_i32, %c0_i32_0 : i32, i32
  }
  func.func @transform_2(%arg0: i32) -> (i32, i32) {
    %c0_i32 = arith.constant 0 : i32
    %c0_i32_0 = arith.constant 0 : i32
    return %arg0, %c0_i32 : i32, i32
  }
}

</mosaic_0001>

<bundles_post_ra>
// kernel: _conv2d_jit.1
= control target key start
LH: loop header
LB: loop body
LE: loop exit
PB: predicated region body
PF: predicated region fallthrough
CT: control target
= control target key end

     0   :  { %s527_s9 = smov 0   ;;  %s596_s0 = inlined_call_operand.vmem [shape: bf16[256,27], index: 0, kind: input, shape index: {}]   ;;  %s597_s1 = inlined_call_operand.vmem [shape: bf16[27,8], index: 1, kind: input, shape index: {}]   ;;  %s598_s2 = inlined_call_operand.vmem [shape: f32[256,8], index: 2, kind: output, shape index: {}]  }
   0x1 LB: > { %s421_s10 = sadd.s32 4294967295, %s509_s9   ;;  %p425_p0 = scmp.ge.s32.totalorder %s509_s9, 1  ;;  %s509_s9 = sphi %s527_s9, %s12_s9  }
   0x2   : > { %p113_p1 = scmp.lt.s32.totalorder %s509_s9, 3 }
   0x4   : > { %p114_p2 = pnand %p425_p0, %p113_p1 }
   0x5   : > { %s426_s13 = sshll.u32 (!%p114_p2), %s421_s10, 4 }
   0x6   : > { %117 = sbr.rel (%p114_p2) target bundleno = 232 (0xe8), region = 28  ;;  %p136_p3 = scmp.lt.s32.totalorder (!%p114_p2), %s426_s13, 31 }
   0xb   : > { %v493_v0 = vld [vmem:[%s597_s1 + $0x8] sm:$0x3f]   ;;  %vm244_vm0 = vcmask 1044480   ;;  %vm245_vm1 = vcmask 1045504   ;;  %v511_v1 = vmov 65535   ;;  %v494_v5 = vld [vmem:[%s597_s1] sm:$0xff]  }
   0xc   : > { %v246_v2 = vsel %vm244_vm0, 4294967295, %v511_v1  ;;  %s600_s13 = smov (!%p136_p3, %s426_s13), 31  ;;  %vm219_vm2 = vcmask 220160   ;;  %vm348_vm3 = vcmask 64512  }
   0xd   : > { %v247_v3 = vsel %vm245_vm1, %v246_v2, 0  ;;  %s427_s16 = sshll.u32 %s600_s13, 2  ;;  %s429_s20 = sshll.u32 %s600_s13, 3 }
   0xe   : > { %v249_v4 = vand.u32 %v493_v0, %v247_v3  ;;  %s139_s19 = scalar_lea.vmem %s596_s0, %s427_s16  ;;  %s559_s23 = scalar_lea.vmem %s598_s2, %s429_s20 }
   0xf   : > { %v495_v6 = vld [vmem:[%s139_s19] sm:$0xff]   ;;  %v497_v8 = vld [vmem:[%s139_s19 + $0x8] sm:$0xff]   ;;  %v499_v10 = vld [vmem:[%s139_s19 + $0x10] sm:$0xff]  }
  0x10   : > { %460 = vmatprep.subr.bf16.mxu0 %v249_v4  ;;  %480 = vmatprep.subr.bf16.mxu1 %v249_v4  ;;  %v496_v7 = vld [vmem:[%s139_s19 + $0x20] sm:$0xff]   ;;  %v498_v9 = vld [vmem:[%s139_s19 + $0x28] sm:$0xff]   ;;  %v500_v11 = vld [vmem:[%s139_s19 + $0x30] sm:$0xff]  }
  0x11   : > { %461 = vmatpush3.bf16.msra.mxu0 %v249_v4  ;;  %482 = vmatpush3.bf16.msra.mxu1 %v249_v4  ;;  %v501_v12 = vld [vmem:[%s139_s19 + $0x18] sm:$0xff]  }
  0x12   : > { %462 = vmatprep.subr.bf16.mxu0 %v494_v5  ;;  %481 = vmatprep.subr.bf16.mxu1 %v494_v5  ;;  %v502_v13 = vld [vmem:[%s139_s19 + $0x38] sm:$0xff]  }
  0x13   : > { %464 = vmatprep.mubr.msk.bf16.mxu0 %vm219_vm2, %v495_v6  ;;  %472 = vmatprep.mubr.msk.bf16.mxu1 %vm219_vm2, %v496_v7 }
  0x15   : > { %463 = vmatpush3.bf16.msra.mxu0 %v494_v5  ;;  %483 = vmatpush3.bf16.msra.mxu1 %v494_v5 }
  0x18   : > { %465 = vmatmul.mubr.msk.bf16.vlgmr.msra.gmra.mxu0 %vm219_vm2, %v497_v8  ;;  %473 = vmatmul.mubr.msk.bf16.vlgmr.msra.gmra.mxu1 %vm219_vm2, %v498_v9 }
  0x19   : > { %468 = vmatprep.mubr.msk.bf16.mxu0 %vm219_vm2, %v499_v10  ;;  %476 = vmatprep.mubr.msk.bf16.mxu1 %vm219_vm2, %v500_v11 }
  0x20   : > { %469 = vmatmul.mubr.msk.bf16.gmra.mxu0 %vm219_vm2, %v501_v12  ;;  %477 = vmatmul.mubr.msk.bf16.gmra.mxu1 %vm219_vm2, %v502_v13 }
  0xd8   : > { %v466_v14 = vpop.f32.mrf.mxu0  ;;  %v474_v15 = vpop.f32.mrf.mxu1 }
  0xd9   : > { %351 = vst.msk [vmem:[%s559_s23 + $0x10] sm:$0xff] %vm348_vm3, %v466_v14  ;;  %359 = vst.msk [vmem:[%s559_s23 + $0x50] sm:$0xff] %vm348_vm3, %v474_v15 }
  0xda   : > { %v285_v16 = vpop.f32.mrf.mxu0  ;;  %v317_v17 = vpop.f32.mrf.mxu1 }
  0xdb   : > { %349 = vst.msk [vmem:[%s559_s23] sm:$0xff] %vm348_vm3, %v285_v16  ;;  %357 = vst.msk [vmem:[%s559_s23 + $0x40] sm:$0xff] %vm348_vm3, %v317_v17 }
  0xdc   : > { %v467_v18 = vpop.f32.mrf.mxu0  ;;  %v475_v19 = vpop.f32.mrf.mxu1 }
  0xdd   : > { %352 = vst.msk [vmem:[%s559_s23 + $0x18] sm:$0xff] %vm348_vm3, %v467_v18  ;;  %360 = vst.msk [vmem:[%s559_s23 + $0x58] sm:$0xff] %vm348_vm3, %v475_v19 }
  0xde   : > { %v288_v20 = vpop.f32.mrf.mxu0  ;;  %v320_v21 = vpop.f32.mrf.mxu1 }
  0xdf   : > { %350 = vst.msk [vmem:[%s559_s23 + $0x8] sm:$0xff] %vm348_vm3, %v288_v20  ;;  %358 = vst.msk [vmem:[%s559_s23 + $0x48] sm:$0xff] %vm348_vm3, %v320_v21 }
  0xe0   : > { %v470_v22 = vpop.f32.mrf.mxu0  ;;  %v478_v23 = vpop.f32.mrf.mxu1 }
  0xe1   : > { %355 = vst.msk [vmem:[%s559_s23 + $0x30] sm:$0xff] %vm348_vm3, %v470_v22  ;;  %363 = vst.msk [vmem:[%s559_s23 + $0x70] sm:$0xff] %vm348_vm3, %v478_v23 }
  0xe2   : > { %v301_v24 = vpop.f32.mrf.mxu0  ;;  %v333_v25 = vpop.f32.mrf.mxu1 }
  0xe3   : > { %353 = vst.msk [vmem:[%s559_s23 + $0x20] sm:$0xff] %vm348_vm3, %v301_v24  ;;  %361 = vst.msk [vmem:[%s559_s23 + $0x60] sm:$0xff] %vm348_vm3, %v333_v25 }
  0xe4   : > { %v471_v26 = vpop.f32.mrf.mxu0  ;;  %v479_v27 = vpop.f32.mrf.mxu1 }
  0xe5   : > { %356 = vst.msk [vmem:[%s559_s23 + $0x38] sm:$0xff] %vm348_vm3, %v471_v26  ;;  %364 = vst.msk [vmem:[%s559_s23 + $0x78] sm:$0xff] %vm348_vm3, %v479_v27 }
  0xe6   : > { %v304_v28 = vpop.f32.mrf.mxu0  ;;  %v336_v29 = vpop.f32.mrf.mxu1 }
  0xe7   : > { %354 = vst.msk [vmem:[%s559_s23 + $0x28] sm:$0xff] %vm348_vm3, %v304_v28  ;;  %362 = vst.msk [vmem:[%s559_s23 + $0x68] sm:$0xff] %vm348_vm3, %v336_v29 }
  0xe8 PF: > { %s12_s9 = sadd.s32 1, %s509_s9  }
  0xe9   : > { %p9_p4 = scmp.ge.s32.totalorder %s12_s9, 4  }
  0xeb   :  { %11 = sbr.rel (!%p9_p4) target bundleno = 1 (0x1), region = 58 }

</bundles_post_ra>
